<compile_context>
chip_gen: v7x
topology: tpu7x:2x2x1
jax: 0.10.0
libtpu: 0.0.40
codegen_flags: <defaults>
</compile_context>

<pallas_src>
import jax
import jax.numpy as jnp
from jax.experimental import pallas as pl
from jax.experimental.pallas import tpu as pltpu

_BN_EPS = 1e-5
_VMEM = pl.BlockSpec(memory_space=pltpu.MemorySpace.VMEM)


def _round_up(x, m):
    return (x + m - 1) // m * m


# --------------------------------------------------------------------------- #
# Fused kernel: median-pool(2) -> (conv3x3 + BN + ReLU) x 2, all in (C, N*H*W)
# --------------------------------------------------------------------------- #
def _make_kernel(H, W, n_valid):
    """Builds the fused kernel for a fixed per-sample (H, W) grid."""
    inv_m = 1.0 / float(n_valid)

    def kernel(x_ref, mask_ref, w1_ref, p1_ref, w2_ref, p2_ref, o_ref):
        # x_ref   : (Cg1, NS)   channel-major input, flattened (n, h, w) on lanes
        # mask_ref: (1,  NS)    1.0 on the valid (H-1)x(W-1) region of each sample
        # w1_ref  : (Cg2, 9*Cg1) tap-major / channel-minor im2col weights (zero padded)
        # w2_ref  : (Cg2, 9*Cg2)
        # p1/p2   : (Cg2, 3)    columns = [conv bias, BN gamma, BN beta]
        # o_ref   : (Cg2, NS)   lane-dense output slab
        NS = x_ref.shape[1]

        def shift(y, off):
            # y[c, m] -> y[c, (m + off) mod NS]   (pltpu.roll == jnp.roll semantics)
            s = (-off) % NS
            return y if s == 0 else pltpu.roll(y, shift=s, axis=1)

        mask = mask_ref[...]                                   # (1, NS)

        # --- MedianPool2d(2, stride=1): lower median of each 2x2 window (min/max) ----
        x = x_ref[...]                                         # (Cg1, NS), lane-dense
        a, b = x, shift(x, 1)
        c, d = shift(x, W), shift(x, W + 1)
        lo_ab, hi_ab = jnp.minimum(a, b), jnp.maximum(a, b)
        lo_cd, hi_cd = jnp.minimum(c, d), jnp.maximum(c, d)
        med = jnp.minimum(jnp.maximum(lo_ab, lo_cd), jnp.minimum(hi_ab, hi_cd))
        med = med * mask        # zero outside valid region == conv1's zero "same" pad

        def conv_bn_relu(y, w_ref, p_ref):
            """3x3 'same' conv as ONE K=9*Cg MXU matmul + train-mode BN + ReLU.

            y : (Cg, NS), ZERO outside the valid region so the toroidal wrap of the
                lane rolls reproduces zero padding.  Returns (Cg2, NS), re-zeroed.
            """
            taps = [shift(y, dy * W + dx) for dy in (-1, 0, 1) for dx in (-1, 0, 1)]
            patches = jnp.concatenate(taps, axis=0)            # (9*Cg, NS), 8-aligned
            acc = jnp.dot(w_ref[...], patches,
                          preferred_element_type=jnp.float32)  # (Cg2, NS), lane-dense
            p = p_ref[...]                                     # (Cg2, 3)
            acc = acc + p[:, 0:1]                              # conv bias

            # BatchNorm2d (training mode): masked batch stats, two-pass biased variance
            mean = jnp.sum(acc * mask, axis=1, keepdims=True) * inv_m
            cen = acc - mean
            var = jnp.sum(cen * cen * mask, axis=1, keepdims=True) * inv_m
            z = cen * jax.lax.rsqrt(var + _BN_EPS) * p[:, 1:2] + p[:, 2:3]
            return jnp.maximum(z, 0.0) * mask                  # ReLU; re-zero pad ring

        y1 = conv_bn_relu(med, w1_ref, p1_ref)                 # (Cg2, NS)
        y2 = conv_bn_relu(y1, w2_ref, p2_ref)                  # (Cg2, NS)
        o_ref[...] = y2.astype(o_ref.dtype)                    # unmasked lane-dense store

    return kernel


def _fused_forward(x_cm, mask, w1_t, p1, w2_t, p2, *, H, W, n_valid):
    cg2, ns = p1.shape[0], x_cm.shape[1]
    return pl.pallas_call(
        _make_kernel(H, W, n_valid),
        out_shape=jax.ShapeDtypeStruct((cg2, ns), jnp.float32),
        in_specs=[_VMEM] * 6,
        out_specs=_VMEM,
    )(x_cm, mask, w1_t, p1, w2_t, p2)


# --------------------------------------------------------------------------- #
# Wrapper: layout plumbing + parameter packing (tiny XLA ops at the boundary)
# --------------------------------------------------------------------------- #
@jax.jit
def median_pool_down(x_nchw, params):
    """Forward pass of MedianPoolDown.  x: (N, Cin, H, W) -> (N, Cout, H-1, W-1)."""
    N, Cin, H, W = x_nchw.shape
    Cout = params["w1"].shape[0]
    Ho, Wo = H - 1, W - 1
    NS = N * H * W
    CG1 = _round_up(Cin, 8)
    CG2 = _round_up(Cout, 8)

    # channel-major, per-sample-contiguous flattened spatial; channels padded to 8
    x = jnp.transpose(x_nchw, (1, 0, 2, 3)).reshape(Cin, NS)
    x = jnp.pad(x, ((0, CG1 - Cin), (0, 0)))

    # valid-position mask: 1 on the (H-1)x(W-1) region of each sample's HxW grid
    m2d = ((jnp.arange(H) < Ho)[:, None] & (jnp.arange(W) < Wo)[None, :])
    mask = jnp.tile(m2d.astype(jnp.float32).reshape(1, H * W), (1, N))   # (1, NS)

    # weights: (Cout, Cin, 3, 3) -> (CG2, 9*CGin), tap-major / channel-minor, zero-padded
    def pack_w(w, cin, cg_in, cg_out):
        co = w.shape[0]
        wt = jnp.transpose(w, (0, 2, 3, 1))                              # (Cout, kh, kw, Cin)
        wt = jnp.pad(wt, ((0, cg_out - co), (0, 0), (0, 0), (0, cg_in - cin)))
        return wt.reshape(cg_out, 9 * cg_in)

    w1_t = pack_w(params["w1"], Cin, CG1, CG2)
    w2_t = pack_w(params["w2"], Cout, CG2, CG2)

    # per-layer epilogue params packed as (CG2, 3) = [bias, gamma, beta]
    def pack_p(b, g, be, cg_out):
        co = b.shape[0]
        p = jnp.stack([b, g, be], axis=1)
        if cg_out > co:   # padded channels: bias 0, gamma 1, beta 0 -> stay exactly 0
            pad = jnp.tile(jnp.array([[0.0, 1.0, 0.0]], jnp.float32), (cg_out - co, 1))
            p = jnp.concatenate([p, pad], axis=0)
        return p

    p1 = pack_p(params["b1"], params["g1"], params["be1"], CG2)
    p2 = pack_p(params["b2"], params["g2"], params["be2"], CG2)

    y = _fused_forward(x, mask, w1_t, p1, w2_t, p2,
                       H=H, W=W, n_valid=N * Ho * Wo)                    # (CG2, NS)
    y = y[:Cout].reshape(Cout, N, H, W)[:, :, :Ho, :Wo]                  # valid region
    return jnp.transpose(y, (1, 0, 2, 3))                                # -> NCHW


# --------------------------------------------------------------------------- #
# Pure-JAX reference (sanity check only)
# --------------------------------------------------------------------------- #
def _ref_forward(x, p):
    a = x[:, :, :-1, :-1]
    b = x[:, :, :-1, 1:]
    c = x[:, :, 1:, :-1]
    d = x[:, :, 1:, 1:]
    med = jnp.sort(jnp.stack([a, b, c, d], axis=-1), axis=-1)[..., 1]   # lower median

    def conv_bn_relu(inp, w, bias, g, be):
        y = jax.lax.conv_general_dilated(
            inp, w, (1, 1), ((1, 1), (1, 1)),
            dimension_numbers=("NCHW", "OIHW", "NCHW")) + bias[None, :, None, None]
        mean = jnp.mean(y, axis=(0, 2, 3), keepdims=True)
        var = jnp.mean((y - mean) ** 2, axis=(0, 2, 3), keepdims=True)
        y = (y - mean) / jnp.sqrt(var + _BN_EPS) * g[None, :, None, None] \
            + be[None, :, None, None]
        return jnp.maximum(y, 0.0)

    y = conv_bn_relu(med, p["w1"], p["b1"], p["g1"], p["be1"])
    y = conv_bn_relu(y, p["w2"], p["b2"], p["g2"], p["be2"])
    return y


# --------------------------------------------------------------------------- #
if __name__ == "__main__":
    key = jax.random.PRNGKey(0)
    N, Cin, H, W = 2, 4, 16, 16
    Cout = 8
    ks = jax.random.split(key, 9)

    x = jax.random.normal(ks[0], (N, Cin, H, W), jnp.float32)
    params = dict(
        w1=0.1 * jax.random.normal(ks[1], (Cout, Cin, 3, 3), jnp.float32),
        b1=0.1 * jax.random.normal(ks[2], (Cout,), jnp.float32),
        g1=1.0 + 0.1 * jax.random.normal(ks[3], (Cout,), jnp.float32),
        be1=0.1 * jax.random.normal(ks[4], (Cout,), jnp.float32),
        w2=0.1 * jax.random.normal(ks[5], (Cout, Cout, 3, 3), jnp.float32),
        b2=0.1 * jax.random.normal(ks[6], (Cout,), jnp.float32),
        g2=1.0 + 0.1 * jax.random.normal(ks[7], (Cout,), jnp.float32),
        be2=0.1 * jax.random.normal(ks[8], (Cout,), jnp.float32),
    )

    out = median_pool_down(x, params)
    out = jax.block_until_ready(out)

    assert out.shape == (N, Cout, H - 1, W - 1), out.shape
    ref = jax.block_until_ready(_ref_forward(x, params))
    assert jnp.all(jnp.isfinite(out))
    assert jnp.allclose(out, ref, atol=3e-2, rtol=3e-2), \
        float(jnp.max(jnp.abs(out - ref)))

    print("KERNEL_OK")
</pallas_src>

<mosaic_0001>
module attributes {stable_mosaic.version = 11 : i64} {
  func.func @kernel(%arg0: memref<8x512xf32, #tpu.memory_space<vmem>>, %arg1: memref<1x512xf32, #tpu.memory_space<vmem>>, %arg2: memref<8x72xf32, #tpu.memory_space<vmem>>, %arg3: memref<8x3xf32, #tpu.memory_space<vmem>>, %arg4: memref<8x72xf32, #tpu.memory_space<vmem>>, %arg5: memref<8x3xf32, #tpu.memory_space<vmem>>, %arg6: memref<8x512xf32, #tpu.memory_space<vmem>>) attributes {dimension_semantics = [], scalar_prefetch = 0 : i64, scratch_operands = 0 : i64, tpu.core_type = #tpu.core_type<tc>} {
    %c0 = arith.constant 0 : index
    %c0_0 = arith.constant 0 : index
    %0 = vector.load %arg1[%c0, %c0_0] : memref<1x512xf32, #tpu.memory_space<vmem>>, vector<1x512xf32>
    %c0_1 = arith.constant 0 : index
    %c0_2 = arith.constant 0 : index
    %1 = vector.load %arg0[%c0_1, %c0_2] : memref<8x512xf32, #tpu.memory_space<vmem>>, vector<8x512xf32>
    %c511_i32 = arith.constant 511 : i32
    %2 = tpu.dynamic_rotate %1 by %c511_i32 dim 1 : vector<8x512xf32>, i32 -> vector<8x512xf32>
    %c496_i32 = arith.constant 496 : i32
    %3 = tpu.dynamic_rotate %1 by %c496_i32 dim 1 : vector<8x512xf32>, i32 -> vector<8x512xf32>
    %c495_i32 = arith.constant 495 : i32
    %4 = tpu.dynamic_rotate %1 by %c495_i32 dim 1 : vector<8x512xf32>, i32 -> vector<8x512xf32>
    %5 = arith.minimumf %1, %2 : vector<8x512xf32>
    %6 = arith.maximumf %1, %2 : vector<8x512xf32>
    %7 = arith.minimumf %3, %4 : vector<8x512xf32>
    %8 = arith.maximumf %3, %4 : vector<8x512xf32>
    %9 = arith.maximumf %5, %7 : vector<8x512xf32>
    %10 = arith.minimumf %6, %8 : vector<8x512xf32>
    %11 = arith.minimumf %9, %10 : vector<8x512xf32>
    %12 = vector.broadcast %0 : vector<1x512xf32> to vector<8x512xf32>
    %13 = arith.mulf %11, %12 : vector<8x512xf32>
    %c17_i32 = arith.constant 17 : i32
    %14 = tpu.dynamic_rotate %13 by %c17_i32 dim 1 : vector<8x512xf32>, i32 -> vector<8x512xf32>
    %c16_i32 = arith.constant 16 : i32
    %15 = tpu.dynamic_rotate %13 by %c16_i32 dim 1 : vector<8x512xf32>, i32 -> vector<8x512xf32>
    %c15_i32 = arith.constant 15 : i32
    %16 = tpu.dynamic_rotate %13 by %c15_i32 dim 1 : vector<8x512xf32>, i32 -> vector<8x512xf32>
    %c1_i32 = arith.constant 1 : i32
    %17 = tpu.dynamic_rotate %13 by %c1_i32 dim 1 : vector<8x512xf32>, i32 -> vector<8x512xf32>
    %c511_i32_3 = arith.constant 511 : i32
    %18 = tpu.dynamic_rotate %13 by %c511_i32_3 dim 1 : vector<8x512xf32>, i32 -> vector<8x512xf32>
    %c497_i32 = arith.constant 497 : i32
    %19 = tpu.dynamic_rotate %13 by %c497_i32 dim 1 : vector<8x512xf32>, i32 -> vector<8x512xf32>
    %c496_i32_4 = arith.constant 496 : i32
    %20 = tpu.dynamic_rotate %13 by %c496_i32_4 dim 1 : vector<8x512xf32>, i32 -> vector<8x512xf32>
    %c495_i32_5 = arith.constant 495 : i32
    %21 = tpu.dynamic_rotate %13 by %c495_i32_5 dim 1 : vector<8x512xf32>, i32 -> vector<8x512xf32>
    %22 = tpu.concatenate %14, %15, %16, %17, %13, %18, %19, %20, %21 in 0 : vector<8x512xf32>, vector<8x512xf32>, vector<8x512xf32>, vector<8x512xf32>, vector<8x512xf32>, vector<8x512xf32>, vector<8x512xf32>, vector<8x512xf32>, vector<8x512xf32> -> vector<72x512xf32>
    %c0_6 = arith.constant 0 : index
    %c0_7 = arith.constant 0 : index
    %23 = vector.load %arg2[%c0_6, %c0_7] : memref<8x72xf32, #tpu.memory_space<vmem>>, vector<8x72xf32>
    %cst = arith.constant dense<0.000000e+00> : vector<8x512xf32>
    %24 = tpu.matmul %23, %22, %cst {dimension_numbers = #tpu.dot_dimension_numbers<[1], [0], [0], [1], [0, 0, 1, 1], [], []>} : vector<8x72xf32>, vector<72x512xf32>, vector<8x512xf32> -> vector<8x512xf32>
    %c0_8 = arith.constant 0 : index
    %c0_9 = arith.constant 0 : index
    %25 = vector.load %arg3[%c0_8, %c0_9] : memref<8x3xf32, #tpu.memory_space<vmem>>, vector<8x3xf32>
    %26 = vector.extract_strided_slice %25 {offsets = [0, 0], sizes = [8, 1], strides = [1, 1]} : vector<8x3xf32> to vector<8x1xf32>
    %27 = vector.broadcast %26 : vector<8x1xf32> to vector<8x512xf32>
    %28 = arith.addf %24, %27 : vector<8x512xf32>
    %29 = vector.broadcast %0 : vector<1x512xf32> to vector<8x512xf32>
    %30 = arith.mulf %28, %29 : vector<8x512xf32>
    %cst_10 = arith.constant dense<0.000000e+00> : vector<8xf32>
    %31 = vector.multi_reduction <add>, %30, %cst_10 [1] : vector<8x512xf32> to vector<8xf32>
    %32 = vector.shape_cast %31 : vector<8xf32> to vector<8x1xf32>
    %cst_11 = arith.constant 0.00222222228 : f32
    %33 = vector.broadcast %cst_11 : f32 to vector<8x1xf32>
    %34 = arith.mulf %32, %33 : vector<8x1xf32>
    %35 = vector.broadcast %34 : vector<8x1xf32> to vector<8x512xf32>
    %36 = arith.subf %28, %35 : vector<8x512xf32>
    %37 = arith.mulf %36, %36 : vector<8x512xf32>
    %38 = vector.broadcast %0 : vector<1x512xf32> to vector<8x512xf32>
    %39 = arith.mulf %37, %38 : vector<8x512xf32>
    %cst_12 = arith.constant dense<0.000000e+00> : vector<8xf32>
    %40 = vector.multi_reduction <add>, %39, %cst_12 [1] : vector<8x512xf32> to vector<8xf32>
    %41 = vector.shape_cast %40 : vector<8xf32> to vector<8x1xf32>
    %cst_13 = arith.constant 0.00222222228 : f32
    %42 = vector.broadcast %cst_13 : f32 to vector<8x1xf32>
    %43 = arith.mulf %41, %42 : vector<8x1xf32>
    %cst_14 = arith.constant 9.99999974E-6 : f32
    %44 = vector.broadcast %cst_14 : f32 to vector<8x1xf32>
    %45 = arith.addf %43, %44 : vector<8x1xf32>
    %46 = math.rsqrt %45 : vector<8x1xf32>
    %47 = vector.broadcast %46 : vector<8x1xf32> to vector<8x512xf32>
    %48 = arith.mulf %36, %47 : vector<8x512xf32>
    %49 = vector.extract_strided_slice %25 {offsets = [0, 1], sizes = [8, 1], strides = [1, 1]} : vector<8x3xf32> to vector<8x1xf32>
    %50 = vector.broadcast %49 : vector<8x1xf32> to vector<8x512xf32>
    %51 = arith.mulf %48, %50 : vector<8x512xf32>
    %52 = vector.extract_strided_slice %25 {offsets = [0, 2], sizes = [8, 1], strides = [1, 1]} : vector<8x3xf32> to vector<8x1xf32>
    %53 = vector.broadcast %52 : vector<8x1xf32> to vector<8x512xf32>
    %54 = arith.addf %51, %53 : vector<8x512xf32>
    %cst_15 = arith.constant 0.000000e+00 : f32
    %55 = vector.broadcast %cst_15 : f32 to vector<8x512xf32>
    %56 = arith.maximumf %54, %55 : vector<8x512xf32>
    %57 = vector.broadcast %0 : vector<1x512xf32> to vector<8x512xf32>
    %58 = arith.mulf %56, %57 : vector<8x512xf32>
    %c17_i32_16 = arith.constant 17 : i32
    %59 = tpu.dynamic_rotate %58 by %c17_i32_16 dim 1 : vector<8x512xf32>, i32 -> vector<8x512xf32>
    %c16_i32_17 = arith.constant 16 : i32
    %60 = tpu.dynamic_rotate %58 by %c16_i32_17 dim 1 : vector<8x512xf32>, i32 -> vector<8x512xf32>
    %c15_i32_18 = arith.constant 15 : i32
    %61 = tpu.dynamic_rotate %58 by %c15_i32_18 dim 1 : vector<8x512xf32>, i32 -> vector<8x512xf32>
    %c1_i32_19 = arith.constant 1 : i32
    %62 = tpu.dynamic_rotate %58 by %c1_i32_19 dim 1 : vector<8x512xf32>, i32 -> vector<8x512xf32>
    %c511_i32_20 = arith.constant 511 : i32
    %63 = tpu.dynamic_rotate %58 by %c511_i32_20 dim 1 : vector<8x512xf32>, i32 -> vector<8x512xf32>
    %c497_i32_21 = arith.constant 497 : i32
    %64 = tpu.dynamic_rotate %58 by %c497_i32_21 dim 1 : vector<8x512xf32>, i32 -> vector<8x512xf32>
    %c496_i32_22 = arith.constant 496 : i32
    %65 = tpu.dynamic_rotate %58 by %c496_i32_22 dim 1 : vector<8x512xf32>, i32 -> vector<8x512xf32>
    %c495_i32_23 = arith.constant 495 : i32
    %66 = tpu.dynamic_rotate %58 by %c495_i32_23 dim 1 : vector<8x512xf32>, i32 -> vector<8x512xf32>
    %67 = tpu.concatenate %59, %60, %61, %62, %58, %63, %64, %65, %66 in 0 : vector<8x512xf32>, vector<8x512xf32>, vector<8x512xf32>, vector<8x512xf32>, vector<8x512xf32>, vector<8x512xf32>, vector<8x512xf32>, vector<8x512xf32>, vector<8x512xf32> -> vector<72x512xf32>
    %c0_24 = arith.constant 0 : index
    %c0_25 = arith.constant 0 : index
    %68 = vector.load %arg4[%c0_24, %c0_25] : memref<8x72xf32, #tpu.memory_space<vmem>>, vector<8x72xf32>
    %cst_26 = arith.constant dense<0.000000e+00> : vector<8x512xf32>
    %69 = tpu.matmul %68, %67, %cst_26 {dimension_numbers = #tpu.dot_dimension_numbers<[1], [0], [0], [1], [0, 0, 1, 1], [], []>} : vector<8x72xf32>, vector<72x512xf32>, vector<8x512xf32> -> vector<8x512xf32>
    %c0_27 = arith.constant 0 : index
    %c0_28 = arith.constant 0 : index
    %70 = vector.load %arg5[%c0_27, %c0_28] : memref<8x3xf32, #tpu.memory_space<vmem>>, vector<8x3xf32>
    %71 = vector.extract_strided_slice %70 {offsets = [0, 0], sizes = [8, 1], strides = [1, 1]} : vector<8x3xf32> to vector<8x1xf32>
    %72 = vector.broadcast %71 : vector<8x1xf32> to vector<8x512xf32>
    %73 = arith.addf %69, %72 : vector<8x512xf32>
    %74 = vector.broadcast %0 : vector<1x512xf32> to vector<8x512xf32>
    %75 = arith.mulf %73, %74 : vector<8x512xf32>
    %cst_29 = arith.constant dense<0.000000e+00> : vector<8xf32>
    %76 = vector.multi_reduction <add>, %75, %cst_29 [1] : vector<8x512xf32> to vector<8xf32>
    %77 = vector.shape_cast %76 : vector<8xf32> to vector<8x1xf32>
    %cst_30 = arith.constant 0.00222222228 : f32
    %78 = vector.broadcast %cst_30 : f32 to vector<8x1xf32>
    %79 = arith.mulf %77, %78 : vector<8x1xf32>
    %80 = vector.broadcast %79 : vector<8x1xf32> to vector<8x512xf32>
    %81 = arith.subf %73, %80 : vector<8x512xf32>
    %82 = arith.mulf %81, %81 : vector<8x512xf32>
    %83 = vector.broadcast %0 : vector<1x512xf32> to vector<8x512xf32>
    %84 = arith.mulf %82, %83 : vector<8x512xf32>
    %cst_31 = arith.constant dense<0.000000e+00> : vector<8xf32>
    %85 = vector.multi_reduction <add>, %84, %cst_31 [1] : vector<8x512xf32> to vector<8xf32>
    %86 = vector.shape_cast %85 : vector<8xf32> to vector<8x1xf32>
    %cst_32 = arith.constant 0.00222222228 : f32
    %87 = vector.broadcast %cst_32 : f32 to vector<8x1xf32>
    %88 = arith.mulf %86, %87 : vector<8x1xf32>
    %cst_33 = arith.constant 9.99999974E-6 : f32
    %89 = vector.broadcast %cst_33 : f32 to vector<8x1xf32>
    %90 = arith.addf %88, %89 : vector<8x1xf32>
    %91 = math.rsqrt %90 : vector<8x1xf32>
    %92 = vector.broadcast %91 : vector<8x1xf32> to vector<8x512xf32>
    %93 = arith.mulf %81, %92 : vector<8x512xf32>
    %94 = vector.extract_strided_slice %70 {offsets = [0, 1], sizes = [8, 1], strides = [1, 1]} : vector<8x3xf32> to vector<8x1xf32>
    %95 = vector.broadcast %94 : vector<8x1xf32> to vector<8x512xf32>
    %96 = arith.mulf %93, %95 : vector<8x512xf32>
    %97 = vector.extract_strided_slice %70 {offsets = [0, 2], sizes = [8, 1], strides = [1, 1]} : vector<8x3xf32> to vector<8x1xf32>
    %98 = vector.broadcast %97 : vector<8x1xf32> to vector<8x512xf32>
    %99 = arith.addf %96, %98 : vector<8x512xf32>
    %cst_34 = arith.constant 0.000000e+00 : f32
    %100 = vector.broadcast %cst_34 : f32 to vector<8x512xf32>
    %101 = arith.maximumf %99, %100 : vector<8x512xf32>
    %102 = vector.broadcast %0 : vector<1x512xf32> to vector<8x512xf32>
    %103 = arith.mulf %101, %102 : vector<8x512xf32>
    %c0_35 = arith.constant 0 : index
    %c0_36 = arith.constant 0 : index
    %104 = vector.load %arg6[%c0_35, %c0_36] : memref<8x512xf32, #tpu.memory_space<vmem>>, vector<8x512xf32>
    tpu.vector_store %arg6[%c0_35, %c0_36], %103 {strides = array<i32>} : memref<8x512xf32, #tpu.memory_space<vmem>>, vector<8x512xf32>,
    return
  }
}

</mosaic_0001>

<bundles_post_ra>
// kernel: median_pool_down.1
= control target key start
LH: loop header
LB: loop body
LE: loop exit
PB: predicated region body
PF: predicated region fallthrough
CT: control target
= control target key end

     0   :  { %s977_s25 = smov 127   ;;  %s978_s28 = smov 112   ;;  %v36_v6 = vlaneseq  ;;  %vm230_vm8 = vcmask 588800   ;;  %s1393_s0 = inlined_call_operand.vmem [shape: f32[8,512], index: 0, kind: input, shape index: {}]   ;;  %s1394_s1 = inlined_call_operand.vmem [shape: f32[1,512], index: 1, kind: input, shape index: {}]   ;;  %s1395_s3 = inlined_call_operand.vmem [shape: f32[8,3], index: 3, kind: input, shape index: {}]   ;;  %s1396_s2 = inlined_call_operand.vmem [shape: f32[8,72], index: 2, kind: input, shape index: {}]   ;;  %s1397_s5 = inlined_call_operand.vmem [shape: f32[8,3], index: 5, kind: input, shape index: {}]   ;;  %s1398_s4 = inlined_call_operand.vmem [shape: f32[8,72], index: 4, kind: input, shape index: {}]   ;;  %s1399_s6 = inlined_call_operand.vmem [shape: f32[8,512], index: 6, kind: output, shape index: {}]  }
   0x1   :  { %v1027_v0 = vld [vmem:[%s1393_s0 + $0x10] sm:$0xff]  ;;  %v24_v1 = vld [vmem:[%s1393_s0] sm:$0xff]  ;;  %v25_v2 = vld [vmem:[%s1393_s0 + $0x8] sm:$0xff]  ;;  %s979_s29 = smov 111   ;;  %s981_s9 = smov 17  }
   0x2   :  { %32 = vrot.lane.b32.xlu1 %v1027_v0, %s977_s25  ;;  %28 = vrot.lane.b32.xlu0 %v24_v1, %s977_s25  ;;  %v1048_v3 = vld [vmem:[%s1393_s0 + $0x18] sm:$0xff]  ;;  %v1058_v8 = vand.u32 127, %v36_v6  ;;  %v99_v12 = vshrl.u32 %v36_v6, 7  ;;  %v23_v25 = vld [vmem:[%s1394_s1] sm:$0xf]  ;;  %s980_s1 = smov 16  }
   0x3   :  { %s982_s10 = smov 1   ;;  %s983_s11 = smov 15  }
   0x4   :  { %vm38_vm0 = vcmp.lt.s32.totalorder %v1058_v8, 127  ;;  %vm51_vm1 = vcmp.lt.s32.totalorder %v1058_v8, 112  ;;  %vm64_vm2 = vcmp.lt.s32.totalorder %v1058_v8, 111  ;;  %v100_v17 = vsub.s32 0, %v99_v12  ;;  %s984_s12 = smov 113  }
   0x5   :  { %v104_v19 = vsub.s32 1, %v99_v12  ;;  %v108_v43 = vsub.s32 2, %v99_v12  ;;  %v112_v44 = vsub.s32 3, %v99_v12  ;;  %vm130_vm3 = vcmp.lt.s32.totalorder %v1058_v8, 17 }
   0x6   :  { %43 = vrot.lane.b32.xlu1 %v24_v1, %s978_s28  ;;  %30 = vrot.lane.b32.xlu0 %v25_v2, %s977_s25  ;;  %v1080_v34 = vrot.slane %v23_v25, %v100_v17  ;;  %vm143_vm4 = vcmp.lt.s32.totalorder %v1058_v8, 16  ;;  %vm156_vm5 = vcmp.lt.s32.totalorder %v1058_v8, 15  ;;  %vm169_vm6 = vcmp.lt.s32.totalorder %v1058_v8, 1 }
   0x7   :  { %v1082_v35 = vrot.slane %v23_v25, %v104_v19  ;;  %v1101_v60 = vrot.slane %v23_v25, %v108_v43  ;;  %vm194_vm7 = vcmp.lt.s32.totalorder %v1058_v8, 113 }
   0xa   :  { %47 = vrot.lane.b32.xlu1 %v1027_v0, %s978_s28  ;;  %45 = vrot.lane.b32.xlu0 %v25_v2, %s978_s28 }
   0xe   :  { %58 = vrot.lane.b32.xlu1 %v25_v2, %s979_s29  ;;  %56 = vrot.lane.b32.xlu0 %v24_v1, %s979_s29 }
  0x12   :  { %34 = vrot.lane.b32.xlu1 %v1048_v3, %s977_s25  ;;  %60 = vrot.lane.b32.xlu0 %v1027_v0, %s979_s29 }
  0x16   :  { %62 = vrot.lane.b32.xlu1 %v1048_v3, %s979_s29  ;;  %49 = vrot.lane.b32.xlu0 %v1048_v3, %s978_s28 }
  0x74   :  { %v33_v4 = vpop.permute.xlu1 %32  ;;  %v29_v5 = vpop.permute.xlu0 %28 }
  0x78   :  { %v44_v7 = vpop.permute.xlu1 %43  ;;  %v31_v9 = vpop.permute.xlu0 %30 }
  0x79   :  { %v41_v13 = vsel %vm38_vm0, %v29_v5, %v31_v9  ;;  %v40_v24 = vsel %vm38_vm0, %v31_v9, %v33_v4 }
  0x7a   :  { %v69_v20 = vmin.f32 %v24_v1, %v41_v13  ;;  %v73_v21 = vmax.f32 %v24_v1, %v41_v13  ;;  %v70_v32 = vmin.f32 %v25_v2, %v40_v24  ;;  %v74_v36 = vmax.f32 %v25_v2, %v40_v24 }
  0x7b   :  { %v1106_v2 = vrot.slane %v23_v25, %v112_v44  ;;  %v985_v13 = vmov 0.0  }
  0x7c   :  { %v48_v10 = vpop.permute.xlu1 %47  ;;  %v46_v11 = vpop.permute.xlu0 %45  ;;  %298 = vmatprep.mubr.f32.mxu0 %v985_v13  ;;  %369 = vmatprep.mubr.f32.mxu1 %v985_v13 }
  0x7d   :  { %v54_v16 = vsel %vm51_vm1, %v44_v7, %v46_v11  ;;  %v53_v33 = vsel %vm51_vm1, %v46_v11, %v48_v10 }
  0x80   :  { %v59_v14 = vpop.permute.xlu1 %58  ;;  %v57_v15 = vpop.permute.xlu0 %56 }
  0x81   :  { %v67_v18 = vsel %vm64_vm2, %v57_v15, %v59_v14 }
  0x82   :  { %v77_v22 = vmin.f32 %v54_v16, %v67_v18  ;;  %v81_v23 = vmax.f32 %v54_v16, %v67_v18 }
  0x84   :  { %v85_v26 = vmax.f32 %v69_v20, %v77_v22  ;;  %v89_v27 = vmin.f32 %v73_v21, %v81_v23  ;;  %v35_v28 = vpop.permute.xlu1 %34  ;;  %v61_v29 = vpop.permute.xlu0 %60 }
  0x85   :  { %v39_v30 = vsel %vm38_vm0, %v33_v4, %v35_v28  ;;  %v66_v31 = vsel %vm64_vm2, %v59_v14, %v61_v29  ;;  %v42_v37 = vsel %vm38_vm0, %v35_v28, %v29_v5  ;;  %v986_v14 = vmov 0  }
  0x86   :  { %v78_v38 = vmin.f32 %v53_v33, %v66_v31  ;;  %v82_v39 = vmax.f32 %v53_v33, %v66_v31  ;;  %v93_v40 = vmin.f32 %v85_v26, %v89_v27  ;;  %v71_v41 = vmin.f32 %v1027_v0, %v39_v30  ;;  %898 = vset.pattern.permute.xlu0 %v986_v14 }
  0x87   :  { %v72_v50 = vmin.f32 %v1048_v3, %v42_v37  ;;  %v75_v51 = vmax.f32 %v1027_v0, %v39_v30  ;;  %v76_v59 = vmax.f32 %v1048_v3, %v42_v37 }
  0x88   :  { %v63_v42 = vpop.permute.xlu1 %62  ;;  %v50_v45 = vpop.permute.xlu0 %49  ;;  %v86_v46 = vmax.f32 %v70_v32, %v78_v38  ;;  %v90_v47 = vmin.f32 %v74_v36, %v82_v39  ;;  %v1098_v58 = vmul.f32 %v1080_v34, %v93_v40 }
  0x89   :  { %v65_v48 = vsel %vm64_vm2, %v61_v29, %v63_v42  ;;  %v68_v49 = vsel %vm64_vm2, %v63_v42, %v57_v15  ;;  %v52_v52 = vsel %vm51_vm1, %v48_v10, %v50_v45  ;;  %v55_v53 = vsel %vm51_vm1, %v50_v45, %v44_v7  ;;  %v1150_v15 = vld [vmem:[%s1395_s3] sm:$0xff] }
  0x8a   :  { %v94_v54 = vmin.f32 %v86_v46, %v90_v47  ;;  %v79_v55 = vmin.f32 %v52_v52, %v65_v48  ;;  %v80_v56 = vmin.f32 %v55_v53, %v68_v49  ;;  %v83_v57 = vmax.f32 %v52_v52, %v65_v48 }
  0x8b   :  { %v84_v61 = vmax.f32 %v55_v53, %v68_v49 }
  0x8c   :  { %v1104_v62 = vmul.f32 %v1082_v35, %v94_v54  ;;  %v87_v63 = vmax.f32 %v71_v41, %v79_v55  ;;  %v88_v0 = vmax.f32 %v72_v50, %v80_v56  ;;  %v91_v1 = vmin.f32 %v75_v51, %v83_v57 }
  0x8d   :  { %v92_v4 = vmin.f32 %v76_v59, %v84_v61 }
  0x8e   :  { %v95_v5 = vmin.f32 %v87_v63, %v91_v1  ;;  %v833_v6 = vpack.i.bf16 %v1104_v62, %v1098_v58 }
  0x8f   :  { %v96_v7 = vmin.f32 %v88_v0, %v92_v4 }
  0x90   :  { %v1111_v9 = vmul.f32 %v1101_v60, %v95_v5  ;;  %834 = vrot.lane.b32.xlu1 %v833_v6, %s980_s1  ;;  %829 = vrot.lane.b32.xlu0 %v833_v6, %s981_s9 }
  0x91   :  { %v1116_v3 = vmul.f32 %v1106_v2, %v96_v7 }
  0x92   :  { %v868_v12 = vpack.i.bf16 %v1111_v9, %v1104_v62 }
  0x93   :  { %v843_v10 = vpack.i.bf16 %v1111_v9, %v1116_v3  ;;  %v873_v11 = vpack.i.bf16 %v1116_v3, %v1098_v58 }
  0x95   :  { %844 = vrot.lane.b32.xlu1 %v843_v10, %s980_s1  ;;  %839 = vrot.lane.b32.xlu0 %v843_v10, %s981_s9 }
  0x99   :  { %854 = vrot.lane.b32.xlu1 %v833_v6, %s982_s10  ;;  %849 = vrot.lane.b32.xlu0 %v833_v6, %s983_s11 }
  0x9d   :  { %864 = vrot.lane.b32.xlu1 %v843_v10, %s982_s10  ;;  %859 = vrot.lane.b32.xlu0 %v843_v10, %s983_s11 }
  0xa1   :  { %874 = vrot.lane.b32.xlu1 %v873_v11, %s977_s25  ;;  %869 = vrot.lane.b32.xlu0 %v868_v12, %s977_s25 }
  0xa5   :  { %884 = vrot.lane.b32.xlu1 %v868_v12, %s978_s28  ;;  %879 = vrot.lane.b32.xlu0 %v868_v12, %s984_s12 }
  0xa9   :  { %894 = vrot.lane.b32.xlu1 %v873_v11, %s978_s28  ;;  %889 = vrot.lane.b32.xlu0 %v873_v11, %s984_s12 }
  0xad   :  { %215 = vrot.lane.b32.xlu1 %v1111_v9, %s979_s29  ;;  %213 = vrot.lane.b32.xlu0 %v1104_v62, %s979_s29 }
  0xb1   :  { %217 = vrot.lane.b32.xlu1 %v1116_v3, %s979_s29  ;;  %211 = vrot.lane.b32.xlu0 %v1098_v58, %s979_s29 }
  0xb5   :  { %227 = vperm.xlu0 %898, %v1150_v15  }
 0x102   :  { %v835_v16 = vpop.permute.xlu1 %834  ;;  %v830_v17 = vpop.permute.xlu0 %829 }
 0x103   :  { %v837_v18 = vunpack.i.h.bf16 %v835_v16  ;;  %v836_v19 = vunpack.i.l.bf16 %v835_v16  ;;  %v832_v20 = vunpack.i.h.bf16 %v830_v17  ;;  %v831_v21 = vunpack.i.l.bf16 %v830_v17 }
 0x105   :  { %v133_v22 = vsel %vm130_vm3, %v831_v21, %v832_v20  ;;  %v146_v23 = vsel %vm143_vm4, %v836_v19, %v837_v18 }
 0x106   :  { %v752_v24 = vpack.c.bf16 %v146_v23, %v133_v22 }
 0x107   :  { %v845_v25 = vpop.permute.xlu1 %844  ;;  %v840_v26 = vpop.permute.xlu0 %839 }
 0x108   :  { %v847_v27 = vunpack.i.h.bf16 %v845_v25  ;;  %v846_v28 = vunpack.i.l.bf16 %v845_v25  ;;  %v842_v29 = vunpack.i.h.bf16 %v840_v26  ;;  %v841_v30 = vunpack.i.l.bf16 %v840_v26  ;;  %753 = vmatprep.subr.bf16.mxu0 %v752_v24 }
 0x10a   :  { %v134_v31 = vsel %vm130_vm3, %v841_v30, %v831_v21  ;;  %v147_v32 = vsel %vm143_vm4, %v846_v28, %v836_v19  ;;  %v131_v33 = vsel %vm130_vm3, %v842_v29, %v841_v30  ;;  %v144_v36 = vsel %vm143_vm4, %v847_v27, %v846_v28 }
 0x10b   :  { %v855_v37 = vpop.permute.xlu1 %854  ;;  %v850_v38 = vpop.permute.xlu0 %849  ;;  %v754_v39 = vpack.c.bf16 %v147_v32, %v134_v31  ;;  %v768_v40 = vpack.c.bf16 %v144_v36, %v131_v33  ;;  %v132_v41 = vsel %vm130_vm3, %v832_v20, %v842_v29  ;;  %v145_v42 = vsel %vm143_vm4, %v837_v18, %v847_v27 }
 0x10c   :  { %v857_v43 = vunpack.i.h.bf16 %v855_v37  ;;  %v856_v44 = vunpack.i.l.bf16 %v855_v37  ;;  %v852_v45 = vunpack.i.h.bf16 %v850_v38  ;;  %v851_v46 = vunpack.i.l.bf16 %v850_v38 }
 0x10d   :  { %755 = vmatpush1.bf16.msra.mxu0 %v754_v39  ;;  %769 = vmatprep.subr.bf16.mxu1 %v768_v40  ;;  %v770_v47 = vpack.c.bf16 %v145_v42, %v132_v41 }
 0x10e   :  { %v159_v48 = vsel %vm156_vm5, %v851_v46, %v852_v45  ;;  %v172_v49 = vsel %vm169_vm6, %v856_v44, %v857_v43 }
 0x10f   :  { %771 = vmatpush1.bf16.msra.mxu1 %v770_v47  ;;  %v865_v50 = vpop.permute.xlu1 %864  ;;  %v860_v51 = vpop.permute.xlu0 %859  ;;  %v756_v52 = vpack.c.bf16 %v172_v49, %v159_v48 }
 0x110   :  { %v867_v53 = vunpack.i.h.bf16 %v865_v50  ;;  %v866_v54 = vunpack.i.l.bf16 %v865_v50  ;;  %v862_v55 = vunpack.i.h.bf16 %v860_v51  ;;  %v861_v56 = vunpack.i.l.bf16 %v860_v51 }
 0x111   :  { %757 = vmatprep.subr.bf16.mxu0 %v756_v52 }
 0x112   :  { %v160_v57 = vsel %vm156_vm5, %v861_v56, %v851_v46  ;;  %v173_v59 = vsel %vm169_vm6, %v866_v54, %v856_v44  ;;  %v157_v61 = vsel %vm156_vm5, %v862_v55, %v861_v56  ;;  %v170_v63 = vsel %vm169_vm6, %v867_v53, %v866_v54 }
 0x113   :  { %v875_v0 = vpop.permute.xlu1 %874  ;;  %v870_v1 = vpop.permute.xlu0 %869  ;;  %v758_v4 = vpack.c.bf16 %v173_v59, %v160_v57  ;;  %v772_v5 = vpack.c.bf16 %v170_v63, %v157_v61  ;;  %v158_v6 = vsel %vm156_vm5, %v852_v45, %v862_v55  ;;  %v171_v7 = vsel %vm169_vm6, %v857_v43, %v867_v53  ;;  %v223_v53 = vld [vmem:[%s1396_s2] sm:$0xff] }
 0x114   :  { %v877_v10 = vunpack.i.h.bf16 %v875_v0  ;;  %v876_v11 = vunpack.i.l.bf16 %v875_v0  ;;  %v872_v12 = vunpack.i.h.bf16 %v870_v1  ;;  %v871_v16 = vunpack.i.l.bf16 %v870_v1 }
 0x115   :  { %759 = vmatpush1.bf16.msra.mxu0 %v758_v4  ;;  %773 = vmatprep.subr.bf16.mxu1 %v772_v5  ;;  %v774_v17 = vpack.c.bf16 %v171_v7, %v158_v6 }
 0x116   :  { %v183_v18 = vsel %vm38_vm0, %v871_v16, %v872_v12  ;;  %v185_v19 = vsel %vm38_vm0, %v877_v10, %v876_v11  ;;  %v184_v20 = vsel %vm38_vm0, %v876_v11, %v871_v16  ;;  %v182_v21 = vsel %vm38_vm0, %v872_v12, %v877_v10 }
 0x117   :  { %775 = vmatpush1.bf16.msra.mxu1 %v774_v17  ;;  %v885_v22 = vpop.permute.xlu1 %884  ;;  %v880_v23 = vpop.permute.xlu0 %879  ;;  %v760_v24 = vpack.c.bf16 %v183_v18, %v1104_v62  ;;  %v776_v25 = vpack.c.bf16 %v185_v19, %v1116_v3  ;;  %v762_v26 = vpack.c.bf16 %v184_v20, %v1098_v58  ;;  %v778_v27 = vpack.c.bf16 %v182_v21, %v1111_v9 }
 0x118   :  { %v887_v28 = vunpack.i.h.bf16 %v885_v22  ;;  %v886_v29 = vunpack.i.l.bf16 %v885_v22  ;;  %v882_v30 = vunpack.i.h.bf16 %v880_v23  ;;  %v881_v31 = vunpack.i.l.bf16 %v880_v23 }
 0x119   :  { %761 = vmatprep.subr.bf16.mxu0 %v760_v24  ;;  %777 = vmatprep.subr.bf16.mxu1 %v776_v25  ;;  %v987_v18 = vmov 1   ;;  %v988_v19 = vmov 2  }
 0x11a   :  { %763 = vmatpush1.bf16.msra.mxu0 %v762_v26  ;;  %v196_v32 = vsel %vm194_vm7, %v881_v31, %v882_v30  ;;  %v208_v33 = vsel %vm51_vm1, %v886_v29, %v887_v28  ;;  %899 = vset.pattern.permute.xlu1 %v987_v18 }
 0x11b   :  { %779 = vmatpush1.bf16.msra.mxu1 %v778_v27  ;;  %v895_v62 = vpop.permute.xlu1 %894  ;;  %v890_v3 = vpop.permute.xlu0 %889  ;;  %v764_v36 = vpack.c.bf16 %v208_v33, %v196_v32  ;;  %900 = vset.pattern.permute.xlu0 %v988_v19 }
 0x11c   :  { %v897_v58 = vunpack.i.h.bf16 %v895_v62  ;;  %v896_v37 = vunpack.i.l.bf16 %v895_v62  ;;  %v892_v9 = vunpack.i.h.bf16 %v890_v3  ;;  %v891_v38 = vunpack.i.l.bf16 %v890_v3 }
 0x11d   :  { %765 = vmatprep.subr.bf16.mxu0 %v764_v36 }
 0x11e   :  { %v197_v39 = vsel %vm194_vm7, %v891_v38, %v881_v31  ;;  %v209_v40 = vsel %vm51_vm1, %v896_v37, %v886_v29  ;;  %v198_v41 = vsel %vm194_vm7, %v892_v9, %v891_v38  ;;  %v210_v42 = vsel %vm51_vm1, %v897_v58, %v896_v37 }
 0x11f   :  { %v216_v43 = vpop.permute.xlu1 %215  ;;  %v214_v44 = vpop.permute.xlu0 %213  ;;  %v766_v45 = vpack.c.bf16 %v209_v40, %v197_v39  ;;  %v780_v46 = vpack.c.bf16 %v210_v42, %v198_v41  ;;  %v195_v47 = vsel %vm194_vm7, %v882_v30, %v892_v9  ;;  %v207_v48 = vsel %vm51_vm1, %v887_v28, %v897_v58 }
 0x120   :  { %v220_v49 = vsel %vm64_vm2, %v214_v44, %v216_v43  ;;  %v782_v50 = vpack.c.bf16 %v207_v48, %v195_v47 }
 0x121   :  { %767 = vmatpush1.bf16.msra.mxu0 %v766_v45  ;;  %781 = vmatprep.subr.bf16.mxu1 %v780_v46 }
 0x122   :  { %250 = vmatprep.subr.mxu0 %v220_v49  ;;  %783 = vmatpush1.bf16.msra.mxu1 %v782_v50 }
 0x123   :  { %v218_v51 = vpop.permute.xlu1 %217  ;;  %v212_v52 = vpop.permute.xlu0 %211 }
 0x124   :  { %v221_v54 = vsel %vm64_vm2, %v212_v52, %v214_v44  ;;  %v222_v55 = vsel %vm64_vm2, %v218_v51, %v212_v52  ;;  %v219_v56 = vsel %vm64_vm2, %v216_v43, %v218_v51 }
 0x125   :  { %251 = vmatpush1.msra.mxu0 %v221_v54  ;;  %321 = vmatprep.subr.mxu1 %v222_v55 }
 0x126   :  { %748 = vmatmul.mubr.msk.f32.vlgmr.msra.gmra.mrb[0].mxu0 %vm230_vm8, %v223_v53  ;;  %322 = vmatpush1.msra.mxu1 %v219_v56 }
 0x127   :  { %749 = vmatmul.mubr.msk.f32.vlgmr.msra.gmra.mrb[0].mxu1 %vm230_vm8, %v223_v53  ;;  %604 = vmatprep.mubr.f32.mxu0 %v985_v13 }
 0x128   :  { %675 = vmatprep.mubr.f32.mxu1 %v985_v13 }
 0x134   :  { %v228_v57 = vpop.permute.xlu0 %227 }
 0x1f9   :  { %v300_v59 = vpop.f32.mrb[0].mxu0 }
 0x1fa   :  { %v301_v61 = vadd.f32 %v300_v59, %v228_v57  ;;  %v302_v63 = vpop.f32.mrb[1].mxu0  ;;  %v371_v0 = vpop.f32.mrb[0].mxu1 }
 0x1fb   :  { %v303_v1 = vadd.f32 %v302_v63, %v228_v57  ;;  %v372_v4 = vadd.f32 %v371_v0, %v228_v57  ;;  %v373_v5 = vpop.f32.mrb[1].mxu1 }
 0x1fc   :  { %v376_v6 = vmul.f32 %v301_v61, %v1080_v34  ;;  %v374_v10 = vadd.f32 %v373_v5, %v228_v57 }
 0x1fd   :  { %v377_v7 = vmul.f32 %v303_v1, %v1082_v35  ;;  %v378_v12 = vmul.f32 %v372_v4, %v1101_v60 }
 0x1fe   :  { %v379_v16 = vmul.f32 %v374_v10, %v1106_v2 }
 0x1ff   :  { %v380_v11 = vadd.f32 %v377_v7, %v376_v6 }
 0x201   :  { %v381_v17 = vadd.f32 %v380_v11, %v378_v12 }
 0x203   :  { %v382_v13 = vadd.f32 %v381_v17, %v379_v16 }
 0x205   :  { %383 = vadd.xlane.f32.xlu1 %v382_v13 }
 0x216   :  { %411 = vperm.xlu1 %899, %v1150_v15  }
 0x292   :  { %v384_v20 = vpop.xlane.xlu1 %383 }
 0x293   :  { %v385_v21 = vmul.f32 0.0022222223, %v384_v20 }
 0x295   :  { %v386_v22 = vsub.f32 %v301_v61, %v385_v21  ;;  %v387_v23 = vsub.f32 %v303_v1, %v385_v21  ;;  %v388_v24 = vsub.f32 %v372_v4, %v385_v21  ;;  %v389_v25 = vsub.f32 %v374_v10, %v385_v21  ;;  %v1285_v4 = vld [vmem:[%s1397_s5] sm:$0xff] }
 0x296   :  { %v412_v39 = vpop.permute.xlu1 %411 }
 0x297   :  { %v390_v26 = vmul.f32 %v386_v22, %v386_v22  ;;  %v391_v27 = vmul.f32 %v387_v23, %v387_v23  ;;  %v392_v28 = vmul.f32 %v388_v24, %v388_v24  ;;  %v393_v29 = vmul.f32 %v389_v25, %v389_v25 }
 0x299   :  { %v394_v30 = vmul.f32 %v390_v26, %v1080_v34  ;;  %v395_v31 = vmul.f32 %v391_v27, %v1082_v35  ;;  %v396_v32 = vmul.f32 %v392_v28, %v1101_v60  ;;  %v397_v62 = vmul.f32 %v393_v29, %v1106_v2 }
 0x29b   :  { %v398_v33 = vadd.f32 %v395_v31, %v394_v30 }
 0x29d   :  { %v399_v3 = vadd.f32 %v398_v33, %v396_v32 }
 0x29f   :  { %v400_v36 = vadd.f32 %v399_v3, %v397_v62 }
 0x2a1   :  { %401 = vadd.xlane.f32.xlu0 %v400_v36 }
 0x2b7   :  { %419 = vperm.xlu0 %900, %v1150_v15  }
 0x2bb   :  { %971 = vset.pattern.permute.xlu0 %v986_v14 }
 0x32e   :  { %v402_v58 = vpop.xlane.xlu0 %401 }
 0x32f   :  { %v403_v37 = vmul.f32 0.0022222223, %v402_v58 }
 0x331   :  { %v404_v9 = vadd.f32 1e-05, %v403_v37 }
 0x333   :  { %973 = vrsqrt.f32 %v404_v9 }
 0x336   :  { %v420_v44 = vpop.permute.xlu0 %419 }
 0x33d   :  { %v974_v38 = vpop.eup %973 }
 0x33e   :  { %v406_v40 = vmul.f32 %v974_v38, %v386_v22  ;;  %v407_v41 = vmul.f32 %v974_v38, %v387_v23  ;;  %v408_v42 = vmul.f32 %v974_v38, %v388_v24  ;;  %v409_v43 = vmul.f32 %v974_v38, %v389_v25 }
 0x340   :  { %v414_v45 = vmul.f32 %v412_v39, %v406_v40  ;;  %v415_v46 = vmul.f32 %v412_v39, %v407_v41  ;;  %v416_v47 = vmul.f32 %v412_v39, %v408_v42  ;;  %v417_v48 = vmul.f32 %v412_v39, %v409_v43 }
 0x342   :  { %v422_v49 = vadd.f32 %v420_v44, %v414_v45  ;;  %v423_v50 = vadd.f32 %v420_v44, %v415_v46  ;;  %v424_v15 = vadd.f32 %v420_v44, %v416_v47  ;;  %v425_v51 = vadd.f32 %v420_v44, %v417_v48 }
 0x344   :  { %v426_v14 = vmax.f32 %v422_v49, 0.0  ;;  %v427_v52 = vmax.f32 %v423_v50, 0.0  ;;  %v428_v53 = vmax.f32 %v424_v15, 0.0  ;;  %v429_v57 = vmax.f32 %v425_v51, 0.0 }
 0x346   :  { %v1246_v54 = vmul.f32 %v426_v14, %v1080_v34  ;;  %v1249_v55 = vmul.f32 %v427_v52, %v1082_v35  ;;  %v1252_v56 = vmul.f32 %v428_v53, %v1101_v60  ;;  %v1261_v63 = vmul.f32 %v429_v57, %v1106_v2 }
 0x348   :  { %v941_v59 = vpack.i.bf16 %v1252_v56, %v1249_v55  ;;  %v901_v61 = vpack.i.bf16 %v1249_v55, %v1246_v54  ;;  %v961_v0 = vpack.i.bf16 %v1261_v63, %v1246_v54  ;;  %v911_v1 = vpack.i.bf16 %v1252_v56, %v1261_v63 }
 0x34a   :  { %942 = vrot.lane.b32.xlu0 %v941_v59, %s977_s25  ;;  %902 = vrot.lane.b32.xlu1 %v901_v61, %s981_s9 }
 0x34e   :  { %952 = vrot.lane.b32.xlu0 %v941_v59, %s984_s12  ;;  %907 = vrot.lane.b32.xlu1 %v901_v61, %s980_s1 }
 0x352   :  { %962 = vrot.lane.b32.xlu0 %v961_v0, %s984_s12  ;;  %912 = vrot.lane.b32.xlu1 %v911_v1, %s981_s9 }
 0x356   :  { %520 = vrot.lane.b32.xlu0 %v1249_v55, %s979_s29  ;;  %917 = vrot.lane.b32.xlu1 %v911_v1, %s980_s1 }
 0x35a   :  { %518 = vrot.lane.b32.xlu0 %v1246_v54, %s979_s29  ;;  %922 = vrot.lane.b32.xlu1 %v901_v61, %s983_s11 }
 0x35e   :  { %927 = vrot.lane.b32.xlu1 %v901_v61, %s982_s10  ;;  %534 = vperm.xlu0 %971, %v1285_v4  }
 0x362   :  { %932 = vrot.lane.b32.xlu1 %v911_v1, %s983_s11  ;;  %972 = vset.pattern.permute.xlu0 %v988_v19 }
 0x366   :  { %937 = vrot.lane.b32.xlu1 %v911_v1, %s982_s10 }
 0x36a   :  { %947 = vrot.lane.b32.xlu1 %v961_v0, %s977_s25 }
 0x36e   :  { %957 = vrot.lane.b32.xlu1 %v941_v59, %s978_s28 }
 0x372   :  { %967 = vrot.lane.b32.xlu1 %v961_v0, %s978_s28 }
 0x376   :  { %522 = vrot.lane.b32.xlu1 %v1252_v56, %s979_s29 }
 0x37a   :  { %524 = vrot.lane.b32.xlu1 %v1261_v63, %s979_s29 }
 0x3bc   :  { %v903_v5 = vpop.permute.xlu1 %902  ;;  %v943_v9 = vpop.permute.xlu0 %942 }
 0x3bd   :  { %v905_v6 = vunpack.i.h.bf16 %v903_v5  ;;  %v904_v7 = vunpack.i.l.bf16 %v903_v5  ;;  %v945_v42 = vunpack.i.h.bf16 %v943_v9  ;;  %v944_v43 = vunpack.i.l.bf16 %v943_v9 }
 0x3bf   :  { %v444_v16 = vsel %vm130_vm3, %v904_v7, %v905_v6  ;;  %v491_v51 = vsel %vm38_vm0, %v944_v43, %v945_v42 }
 0x3c0   :  { %v908_v10 = vpop.permute.xlu1 %907  ;;  %v953_v46 = vpop.permute.xlu0 %952 }
 0x3c1   :  { %v910_v11 = vunpack.i.h.bf16 %v908_v10  ;;  %v909_v12 = vunpack.i.l.bf16 %v908_v10  ;;  %v955_v10 = vunpack.i.h.bf16 %v953_v46 }
 0x3c3   :  { %v456_v17 = vsel %vm143_vm4, %v909_v12, %v910_v11 }
 0x3c4   :  { %v913_v13 = vpop.permute.xlu1 %912  ;;  %v784_v18 = vpack.c.bf16 %v456_v17, %v444_v16 }
 0x3c5   :  { %v915_v20 = vunpack.i.h.bf16 %v913_v13  ;;  %v914_v21 = vunpack.i.l.bf16 %v913_v13 }
 0x3c6   :  { %785 = vmatprep.subr.bf16.mxu0 %v784_v18 }
 0x3c7   :  { %v443_v24 = vsel %vm130_vm3, %v905_v6, %v915_v20  ;;  %v445_v25 = vsel %vm130_vm3, %v914_v21, %v904_v7  ;;  %v442_v28 = vsel %vm130_vm3, %v915_v20, %v914_v21  ;;  %v792_v7 = vpack.c.bf16 %v491_v51, %v1249_v55 }
 0x3c8   :  { %v918_v19 = vpop.permute.xlu1 %917 }
 0x3c9   :  { %v920_v22 = vunpack.i.h.bf16 %v918_v19  ;;  %v919_v23 = vunpack.i.l.bf16 %v918_v19 }
 0x3cb   :  { %v455_v26 = vsel %vm143_vm4, %v910_v11, %v920_v22  ;;  %v457_v27 = vsel %vm143_vm4, %v919_v23, %v909_v12  ;;  %v454_v29 = vsel %vm143_vm4, %v920_v22, %v919_v23  ;;  %v963_v11 = vpop.permute.xlu0 %962  ;;  %v954_v12 = vunpack.i.l.bf16 %v953_v46 }
 0x3cc   :  { %v786_v30 = vpack.c.bf16 %v457_v27, %v445_v25  ;;  %v802_v31 = vpack.c.bf16 %v455_v26, %v443_v24  ;;  %v923_v32 = vpop.permute.xlu1 %922  ;;  %v800_v33 = vpack.c.bf16 %v454_v29, %v442_v28  ;;  %v965_v23 = vunpack.i.h.bf16 %v963_v11 }
 0x3cd   :  { %v925_v62 = vunpack.i.h.bf16 %v923_v32  ;;  %v924_v3 = vunpack.i.l.bf16 %v923_v32  ;;  %v964_v24 = vunpack.i.l.bf16 %v963_v11  ;;  %v503_v25 = vsel %vm194_vm7, %v954_v12, %v955_v10 }
 0x3ce   :  { %787 = vmatpush1.bf16.msra.mxu0 %v786_v30  ;;  %801 = vmatprep.subr.bf16.mxu1 %v800_v33 }
 0x3cf   :  { %803 = vmatpush1.bf16.msra.mxu1 %v802_v31  ;;  %v468_v38 = vsel %vm156_vm5, %v924_v3, %v925_v62  ;;  %v521_v27 = vpop.permute.xlu0 %520  ;;  %v504_v30 = vsel %vm194_vm7, %v964_v24, %v954_v12  ;;  %v505_v33 = vsel %vm194_vm7, %v965_v23, %v964_v24 }
 0x3d0   :  { %v928_v36 = vpop.permute.xlu1 %927 }
 0x3d1   :  { %v930_v58 = vunpack.i.h.bf16 %v928_v36  ;;  %v929_v37 = vunpack.i.l.bf16 %v928_v36 }
 0x3d3   :  { %v480_v39 = vsel %vm169_vm6, %v929_v37, %v930_v58 }
 0x3d4   :  { %v933_v40 = vpop.permute.xlu1 %932  ;;  %v788_v41 = vpack.c.bf16 %v480_v39, %v468_v38  ;;  %v519_v38 = vpop.permute.xlu0 %518 }
 0x3d5   :  { %v935_v44 = vunpack.i.h.bf16 %v933_v40  ;;  %v934_v45 = vunpack.i.l.bf16 %v933_v40  ;;  %v530_v40 = vld [vmem:[%s1398_s4] sm:$0xff] }
 0x3d6   :  { %789 = vmatprep.subr.bf16.mxu0 %v788_v41  ;;  %v528_v41 = vsel %vm64_vm2, %v519_v38, %v521_v27 }
 0x3d7   :  { %v467_v50 = vsel %vm156_vm5, %v925_v62, %v935_v44  ;;  %v469_v15 = vsel %vm156_vm5, %v934_v45, %v924_v3  ;;  %v466_v53 = vsel %vm156_vm5, %v935_v44, %v934_v45 }
 0x3d8   :  { %v938_v47 = vpop.permute.xlu1 %937 }
 0x3d9   :  { %v940_v48 = vunpack.i.h.bf16 %v938_v47  ;;  %v939_v49 = vunpack.i.l.bf16 %v938_v47 }
 0x3db   :  { %v479_v14 = vsel %vm169_vm6, %v930_v58, %v940_v48  ;;  %v481_v52 = vsel %vm169_vm6, %v939_v49, %v929_v37  ;;  %v478_v57 = vsel %vm169_vm6, %v940_v48, %v939_v49 }
 0x3dc   :  { %v790_v59 = vpack.c.bf16 %v481_v52, %v469_v15  ;;  %v806_v61 = vpack.c.bf16 %v479_v14, %v467_v50  ;;  %v948_v0 = vpop.permute.xlu1 %947  ;;  %v804_v1 = vpack.c.bf16 %v478_v57, %v466_v53 }
 0x3dd   :  { %v950_v5 = vunpack.i.h.bf16 %v948_v0  ;;  %v949_v6 = vunpack.i.l.bf16 %v948_v0  ;;  %v535_v44 = vpop.permute.xlu0 %534 }
 0x3de   :  { %791 = vmatpush1.bf16.msra.mxu0 %v790_v59  ;;  %805 = vmatprep.subr.bf16.mxu1 %v804_v1 }
 0x3df   :  { %v490_v16 = vsel %vm38_vm0, %v945_v42, %v950_v5  ;;  %v492_v17 = vsel %vm38_vm0, %v949_v6, %v944_v43  ;;  %793 = vmatprep.subr.bf16.mxu0 %v792_v7  ;;  %807 = vmatpush1.bf16.msra.mxu1 %v806_v61  ;;  %v493_v13 = vsel %vm38_vm0, %v950_v5, %v949_v6 }
 0x3e0   :  { %v810_v18 = vpack.c.bf16 %v490_v16, %v1252_v56  ;;  %v794_v55 = vpack.c.bf16 %v492_v17, %v1246_v54  ;;  %v958_v20 = vpop.permute.xlu1 %957  ;;  %v808_v21 = vpack.c.bf16 %v493_v13, %v1261_v63  ;;  %v502_v63 = vsel %vm194_vm7, %v955_v10, %v965_v23 }
 0x3e1   :  { %v960_v19 = vunpack.i.h.bf16 %v958_v20  ;;  %v959_v22 = vunpack.i.l.bf16 %v958_v20 }
 0x3e2   :  { %795 = vmatpush1.bf16.msra.mxu0 %v794_v55  ;;  %809 = vmatprep.subr.bf16.mxu1 %v808_v21 }
 0x3e3   :  { %811 = vmatpush1.bf16.msra.mxu1 %v810_v18  ;;  %v515_v26 = vsel %vm51_vm1, %v959_v22, %v960_v19 }
 0x3e4   :  { %v968_v56 = vpop.permute.xlu1 %967  ;;  %v796_v28 = vpack.c.bf16 %v515_v26, %v503_v25 }
 0x3e5   :  { %v970_v54 = vunpack.i.h.bf16 %v968_v56  ;;  %v969_v29 = vunpack.i.l.bf16 %v968_v56 }
 0x3e6   :  { %797 = vmatprep.subr.bf16.mxu0 %v796_v28 }
 0x3e7   :  { %v514_v31 = vsel %vm51_vm1, %v960_v19, %v970_v54  ;;  %v516_v32 = vsel %vm51_vm1, %v969_v29, %v959_v22  ;;  %v517_v62 = vsel %vm51_vm1, %v970_v54, %v969_v29 }
 0x3e8   :  { %v798_v3 = vpack.c.bf16 %v516_v32, %v504_v30  ;;  %v814_v36 = vpack.c.bf16 %v514_v31, %v502_v63  ;;  %v523_v58 = vpop.permute.xlu1 %522  ;;  %v812_v37 = vpack.c.bf16 %v517_v62, %v505_v33 }
 0x3e9   :  { %v527_v9 = vsel %vm64_vm2, %v521_v27, %v523_v58 }
 0x3ea   :  { %799 = vmatpush1.bf16.msra.mxu0 %v798_v3  ;;  %813 = vmatprep.subr.bf16.mxu1 %v812_v37 }
 0x3eb   :  { %556 = vmatprep.subr.mxu0 %v527_v9  ;;  %815 = vmatpush1.bf16.msra.mxu1 %v814_v36 }
 0x3ec   :  { %v525_v39 = vpop.permute.xlu1 %524 }
 0x3ed   :  { %v526_v42 = vsel %vm64_vm2, %v523_v58, %v525_v39  ;;  %v529_v43 = vsel %vm64_vm2, %v525_v39, %v519_v38 }
 0x3ee   :  { %557 = vmatpush1.msra.mxu0 %v528_v41  ;;  %627 = vmatprep.subr.mxu1 %v529_v43 }
 0x3ef   :  { %750 = vmatmul.mubr.msk.f32.vlgmr.msra.gmra.mrb[2].mxu0 %vm230_vm8, %v530_v40  ;;  %628 = vmatpush1.msra.mxu1 %v526_v42 }
 0x3f0   :  { %751 = vmatmul.mubr.msk.f32.vlgmr.msra.gmra.mrb[2].mxu1 %vm230_vm8, %v530_v40 }
 0x4c2   :  { %v606_v45 = vpop.f32.mrb[2].mxu0 }
 0x4c3   :  { %v607_v46 = vadd.f32 %v606_v45, %v535_v44  ;;  %v608_v47 = vpop.f32.mrb[3].mxu0  ;;  %v677_v48 = vpop.f32.mrb[2].mxu1 }
 0x4c4   :  { %v609_v49 = vadd.f32 %v608_v47, %v535_v44  ;;  %v678_v50 = vadd.f32 %v677_v48, %v535_v44  ;;  %v679_v15 = vpop.f32.mrb[3].mxu1 }
 0x4c5   :  { %v682_v51 = vmul.f32 %v607_v46, %v1080_v34  ;;  %v680_v14 = vadd.f32 %v679_v15, %v535_v44 }
 0x4c6   :  { %v683_v8 = vmul.f32 %v609_v49, %v1082_v35  ;;  %v684_v53 = vmul.f32 %v678_v50, %v1101_v60 }
 0x4c7   :  { %v685_v57 = vmul.f32 %v680_v14, %v1106_v2 }
 0x4c8   :  { %v686_v52 = vadd.f32 %v683_v8, %v682_v51 }
 0x4ca   :  { %v687_v59 = vadd.f32 %v686_v52, %v684_v53 }
 0x4cc   :  { %v688_v61 = vadd.f32 %v687_v59, %v685_v57 }
 0x4ce   :  { %689 = vadd.xlane.f32.xlu1 %v688_v61 }
 0x4df   :  { %717 = vperm.xlu1 %899, %v1285_v4  }
 0x55b   :  { %v690_v0 = vpop.xlane.xlu1 %689 }
 0x55c   :  { %v691_v1 = vmul.f32 0.0022222223, %v690_v0 }
 0x55e   :  { %v692_v5 = vsub.f32 %v607_v46, %v691_v1  ;;  %v693_v6 = vsub.f32 %v609_v49, %v691_v1  ;;  %v694_v7 = vsub.f32 %v678_v50, %v691_v1  ;;  %v695_v10 = vsub.f32 %v680_v14, %v691_v1 }
 0x55f   :  { %v718_v29 = vpop.permute.xlu1 %717 }
 0x560   :  { %v696_v11 = vmul.f32 %v692_v5, %v692_v5  ;;  %v697_v12 = vmul.f32 %v693_v6, %v693_v6  ;;  %v698_v16 = vmul.f32 %v694_v7, %v694_v7  ;;  %v699_v17 = vmul.f32 %v695_v10, %v695_v10 }
 0x562   :  { %v700_v13 = vmul.f32 %v696_v11, %v1080_v34  ;;  %v701_v18 = vmul.f32 %v697_v12, %v1082_v35  ;;  %v702_v55 = vmul.f32 %v698_v16, %v1101_v60  ;;  %v703_v21 = vmul.f32 %v699_v17, %v1106_v2 }
 0x564   :  { %v704_v20 = vadd.f32 %v701_v18, %v700_v13 }
 0x566   :  { %v705_v19 = vadd.f32 %v704_v20, %v702_v55 }
 0x568   :  { %v706_v22 = vadd.f32 %v705_v19, %v703_v21 }
 0x56a   :  { %707 = vadd.xlane.f32.xlu0 %v706_v22 }
 0x580   :  { %725 = vperm.xlu0 %972, %v1285_v4  }
 0x5f7   :  { %v708_v23 = vpop.xlane.xlu0 %707 }
 0x5f8   :  { %v709_v24 = vmul.f32 0.0022222223, %v708_v23 }
 0x5fa   :  { %v710_v25 = vadd.f32 1e-05, %v709_v24 }
 0x5fc   :  { %975 = vrsqrt.f32 %v710_v25 }
 0x5ff   :  { %v726_v63 = vpop.permute.xlu0 %725 }
 0x606   :  { %v976_v26 = vpop.eup %975 }
 0x607   :  { %v712_v27 = vmul.f32 %v976_v26, %v692_v5  ;;  %v713_v56 = vmul.f32 %v976_v26, %v693_v6  ;;  %v714_v28 = vmul.f32 %v976_v26, %v694_v7  ;;  %v715_v54 = vmul.f32 %v976_v26, %v695_v10 }
 0x609   :  { %v720_v30 = vmul.f32 %v718_v29, %v712_v27  ;;  %v721_v31 = vmul.f32 %v718_v29, %v713_v56  ;;  %v722_v32 = vmul.f32 %v718_v29, %v714_v28  ;;  %v723_v33 = vmul.f32 %v718_v29, %v715_v54 }
 0x60b   :  { %v728_v62 = vadd.f32 %v726_v63, %v720_v30  ;;  %v729_v3 = vadd.f32 %v726_v63, %v721_v31  ;;  %v730_v36 = vadd.f32 %v726_v63, %v722_v32  ;;  %v731_v58 = vadd.f32 %v726_v63, %v723_v33 }
 0x60d   :  { %v732_v4 = vmax.f32 %v728_v62, 0.0  ;;  %v733_v37 = vmax.f32 %v729_v3, 0.0  ;;  %v734_v9 = vmax.f32 %v730_v36, 0.0  ;;  %v735_v38 = vmax.f32 %v731_v58, 0.0 }
 0x60f   :  { %v736_v39 = vmul.f32 %v732_v4, %v1080_v34  ;;  %v737_v40 = vmul.f32 %v733_v37, %v1082_v35  ;;  %v738_v41 = vmul.f32 %v734_v9, %v1101_v60  ;;  %v739_v42 = vmul.f32 %v735_v38, %v1106_v2 }
 0x611   :  { %740 = vst [vmem:[%s1399_s6] sm:$0xff] %v736_v39  ;;  %741 = vst [vmem:[%s1399_s6 + $0x8] sm:$0xff] %v737_v40 }
 0x612   :  { %742 = vst [vmem:[%s1399_s6 + $0x10] sm:$0xff] %v738_v41  ;;  %743 = vst [vmem:[%s1399_s6 + $0x18] sm:$0xff] %v739_v42 }

</bundles_post_ra>
